<compile_context>
chip_gen: v7x
topology: tpu7x:2x2x1
jax: 0.10.0
libtpu: 0.0.40
codegen_flags: <defaults>
</compile_context>

<pallas_src>
import functools
import math

import jax
import jax.numpy as jnp
from jax.experimental import pallas as pl
from jax.experimental.pallas import tpu as pltpu


def _cdiv(a: int, b: int) -> int:
    return -(-a // b)


def _round_up(a: int, b: int) -> int:
    return _cdiv(a, b) * b


def _sublane_multiple(dtype) -> int:
    # Sub-32-bit dtypes pack along sublanes: (8,128) f32, (16,128) bf16, (32,128) int8/fp8.
    itemsize = jnp.dtype(dtype).itemsize
    return max(8, 32 // max(itemsize, 1))


def _bias_layer_kernel(alpha_ref, beta_ref, x_ref, o_ref, *, bias: bool):
    # alpha_ref / beta_ref: SMEM scalars of shape (1,)
    scale = alpha_ref[0] + jnp.float32(1.0)
    y = x_ref[...].astype(jnp.float32) * scale
    if bias:  # static Python flag (matches PyTorch's `bias=True` kwarg)
        y = y + beta_ref[0]
    o_ref[...] = y.astype(o_ref.dtype)


def bias_layer_forward(x, alpha, beta, bias: bool = True, *,
                       min_pallas_elems: int = 256 * 1024,
                       max_tile_bytes: int = 4 * 1024 * 1024):
    """Apply (alpha + 1) * x (+ beta) for x of any shape.

    Small inputs take a plain-JAX fast path; larger inputs go through a Pallas
    kernel on a copy-free lane-dense 2-D view of x.
    """
    orig_shape = x.shape
    total = int(math.prod(orig_shape)) if x.ndim else 1

    alpha_s = jnp.asarray(alpha, jnp.float32).reshape((1,))
    beta_s = jnp.asarray(beta, jnp.float32).reshape((1,))

    # ---- Small-input fast path: one fused XLA elementwise op, no kernel launch.
    if total == 0 or total < min_pallas_elems:
        y = (alpha_s[0] + 1.0) * x
        if bias:
            y = y + beta_s[0]
        return y.astype(x.dtype)

    # ---- Choose a copy-free 2-D (rows, cols) view.
    last = int(orig_shape[-1]) if x.ndim >= 1 else 1
    pad = 0
    if total % 512 == 0:
        cols = 512                       # lane-dense, unmasked stores
    elif total % 256 == 0:
        cols = 256
    elif total % 128 == 0:
        cols = 128
    elif x.ndim >= 2 and last >= 128:
        cols = last                      # full-dim lane block; masked tail stores, no copies
    else:
        cols = 128                       # rare fallback: pad <=127 elements
        pad = _round_up(total, 128) - total

    if pad:
        flat = jnp.pad(x.reshape(-1), (0, pad))
        x2d = flat.reshape(-1, cols)
    else:
        x2d = x.reshape(-1, cols)        # contiguous reshape: no data movement
    rows = x2d.shape[0]

    # ---- Row tile size: <= max_tile_bytes, dtype-aware sublane multiple,
    #      and (for multi-tile grids) an even step count so v7x's 2 TCs balance.
    sub = _sublane_multiple(x.dtype)
    itemsize = jnp.dtype(x.dtype).itemsize
    max_br = max(sub, (max_tile_bytes // (cols * itemsize)) // sub * sub)

    if rows <= max_br:
        br = rows                        # single full-array block
        grid_rows = 1
    else:
        n_steps = _round_up(_cdiv(rows, max_br), 2)   # even split across 2 TensorCores
        br = _round_up(_cdiv(rows, n_steps), sub)
        grid_rows = _cdiv(rows, br)      # partial tail block is masked by Pallas

    tile_bytes = br * cols * itemsize
    # in + out double buffers (4 x tile) + slack; safe on v5e/v6e (128 MiB) and v7x (64 MiB).
    vmem_limit = max(4 * tile_bytes + (2 << 20), 16 << 20)

    kernel = functools.partial(_bias_layer_kernel, bias=bias)

    out2d = pl.pallas_call(
        kernel,
        out_shape=jax.ShapeDtypeStruct((rows, cols), x.dtype),
        grid=(grid_rows,),
        in_specs=[
            pl.BlockSpec(memory_space=pltpu.SMEM),              # alpha (scalar)
            pl.BlockSpec(memory_space=pltpu.SMEM),              # beta  (scalar)
            pl.BlockSpec((br, cols), lambda i: (i, 0)),         # x tile
        ],
        out_specs=pl.BlockSpec((br, cols), lambda i: (i, 0)),
        compiler_params=pltpu.CompilerParams(
            dimension_semantics=("parallel",),
            vmem_limit_bytes=int(vmem_limit),
        ),
    )(alpha_s, beta_s, x2d)

    if pad:
        return out2d.reshape(-1)[:total].reshape(orig_shape)
    return out2d.reshape(orig_shape)     # contiguous reshape back: no data movement


if __name__ == "__main__":
    key = jax.random.PRNGKey(0)
    k1, k2, k3, k4 = jax.random.split(key, 4)

    # nn.Parameter(torch.zeros(1)) init, nudged so the math is exercised.
    alpha = jnp.zeros((1,), dtype=jnp.float32) + 0.25
    beta = jnp.zeros((1,), dtype=jnp.float32) + 0.5

    def ref(x, bias=True):
        y = (alpha[0] + 1.0) * x
        return y + beta[0] if bias else y

    # 1) Small logits-like input (num_classes not a multiple of 128) -> fast path.
    x_small = jax.random.normal(k1, (16, 100), dtype=jnp.float32)
    out_small = jax.block_until_ready(bias_layer_forward(x_small, alpha, beta, bias=True))
    assert out_small.shape == x_small.shape
    assert jnp.allclose(out_small, ref(x_small), atol=1e-6, rtol=1e-6)

    # bias=False path.
    out_nb = jax.block_until_ready(bias_layer_forward(x_small, alpha, beta, bias=False))
    assert jnp.allclose(out_nb, ref(x_small, bias=False), atol=1e-6, rtol=1e-6)

    # 2) Force the Pallas path on a small lane-aligned input (single block, no copies).
    x_blk = jax.random.normal(k2, (64, 128), dtype=jnp.float32)
    out_blk = jax.block_until_ready(
        bias_layer_forward(x_blk, alpha, beta, min_pallas_elems=0))
    assert jnp.allclose(out_blk, ref(x_blk), atol=1e-6, rtol=1e-6)

    # 3) Multi-tile grid path (forced small tiles), rows divide evenly -> no masking.
    x_grid = jax.random.normal(k3, (2048, 384), dtype=jnp.float32)
    out_grid = jax.block_until_ready(bias_layer_forward(
        x_grid, alpha, beta, min_pallas_elems=0, max_tile_bytes=512 * 1024))
    assert out_grid.shape == x_grid.shape
    assert jnp.allclose(out_grid, ref(x_grid), atol=1e-6, rtol=1e-6)

    # 4) Multi-tile grid with a partial (Pallas-masked) tail block; no jnp.pad in wrapper.
    x_tail = jax.random.normal(k4, (1000, 384), dtype=jnp.float32)
    out_tail = jax.block_until_ready(bias_layer_forward(
        x_tail, alpha, beta, min_pallas_elems=0, max_tile_bytes=512 * 1024))
    assert out_tail.shape == x_tail.shape
    assert jnp.allclose(out_tail, ref(x_tail), atol=1e-6, rtol=1e-6)

    # 5) bf16 input exercising dtype-aware sublane rounding and the f32-compute path.
    x_bf16 = jax.random.normal(k2, (256, 512), dtype=jnp.bfloat16)
    out_bf16 = jax.block_until_ready(
        bias_layer_forward(x_bf16, alpha, beta, min_pallas_elems=0))
    assert out_bf16.dtype == jnp.bfloat16
    assert jnp.allclose(out_bf16.astype(jnp.float32),
                        ref(x_bf16.astype(jnp.float32)), atol=2e-2, rtol=2e-2)

    print("KERNEL_OK")
</pallas_src>

<mosaic_0001>
module attributes {stable_mosaic.version = 11 : i64} {
  func.func @_bias_layer_kernel(%arg0: i32, %arg1: memref<1xf32, #tpu.memory_space<smem>>, %arg2: memref<1xf32, #tpu.memory_space<smem>>, %arg3: memref<16x512xf32, #tpu.memory_space<vmem>>, %arg4: memref<16x512xf32, #tpu.memory_space<vmem>>) attributes {dimension_semantics = [#tpu.dimension_semantics<parallel>], iteration_bounds = array<i64: 1>, scalar_prefetch = 0 : i64, scratch_operands = 0 : i64, tpu.core_type = #tpu.core_type<tc>, window_params = [{transform_indices = @transform_0, window_bounds = array<i64: 1>}, {transform_indices = @transform_1, window_bounds = array<i64: 1>}, {transform_indices = @transform_2, window_bounds = array<i64: 16, 512>}, {transform_indices = @transform_3, window_bounds = array<i64: 16, 512>}]} {
    %c0 = arith.constant 0 : index
    %0 = memref.load %arg1[%c0] : memref<1xf32, #tpu.memory_space<smem>>
    %cst = arith.constant 1.000000e+00 : f32
    %1 = arith.addf %0, %cst : f32
    %c0_0 = arith.constant 0 : index
    %c0_1 = arith.constant 0 : index
    %2 = vector.load %arg3[%c0_0, %c0_1] : memref<16x512xf32, #tpu.memory_space<vmem>>, vector<16x512xf32>
    %3 = vector.broadcast %1 : f32 to vector<16x512xf32>
    %4 = arith.mulf %2, %3 : vector<16x512xf32>
    %c0_2 = arith.constant 0 : index
    %5 = memref.load %arg2[%c0_2] : memref<1xf32, #tpu.memory_space<smem>>
    %6 = vector.broadcast %5 : f32 to vector<16x512xf32>
    %7 = arith.addf %4, %6 : vector<16x512xf32>
    %c0_3 = arith.constant 0 : index
    %c0_4 = arith.constant 0 : index
    %8 = vector.load %arg4[%c0_3, %c0_4] : memref<16x512xf32, #tpu.memory_space<vmem>>, vector<16x512xf32>
    tpu.vector_store %arg4[%c0_3, %c0_4], %7 {strides = array<i32>} : memref<16x512xf32, #tpu.memory_space<vmem>>, vector<16x512xf32>,
    return
  }
  func.func @transform_0(%arg0: i32) -> i32 {
    %c0_i32 = arith.constant 0 : i32
    %c0_i32_0 = arith.constant 0 : i32
    return %c0_i32 : i32
  }
  func.func @transform_1(%arg0: i32) -> i32 {
    %c0_i32 = arith.constant 0 : i32
    %c0_i32_0 = arith.constant 0 : i32
    return %c0_i32 : i32
  }
  func.func @transform_2(%arg0: i32) -> (i32, i32) {
    %c0_i32 = arith.constant 0 : i32
    %c0_i32_0 = arith.constant 0 : i32
    return %arg0, %c0_i32 : i32, i32
  }
  func.func @transform_3(%arg0: i32) -> (i32, i32) {
    %c0_i32 = arith.constant 0 : i32
    %c0_i32_0 = arith.constant 0 : i32
    return %arg0, %c0_i32 : i32, i32
  }
}

</mosaic_0001>

<bundles_post_ra>
// kernel: tpu_custom_call.1
= control target key start
LH: loop header
LB: loop body
LE: loop exit
PB: predicated region body
PF: predicated region fallthrough
CT: control target
= control target key end

     0   :  { %10 = vsyncpa [#allocation5], 0  ;;  %s197_s0 = inlined_call_operand.<no memory space> [shape: f32[1], index: 0, kind: input, shape index: {}]   ;;  %s198_s1 = inlined_call_operand.<no memory space> [shape: f32[1], index: 1, kind: input, shape index: {}]   ;;  %s199_s2 = inlined_call_operand.hbm [shape: f32[16,512], index: 2, kind: input, shape index: {}]   ;;  %s200_s3 = inlined_call_operand.hbm [shape: f32[16,512], index: 3, kind: output, shape index: {}]  }
   0x1   :  { %11 = vsyncpa [#allocation6], 0  ;;  %s137_s12 = smov [#allocation4]   ;;  %s89_s16 = scalar_lea.hbm %s199_s2, 1024 }
   0x2   :  { %s21_s13 = sshll.u32 %s137_s12, 4  ;;  %p90_p0 = scmp.ne.s32.totalorder %s199_s2, %s89_s16  ;;  %s22_s13 = int_to_ptr.vmem [resolvable:$true] %s21_s13 }
   0x3   :  { %p93_p1 = scmp.lt.u32.totalorder %s89_s16, %s199_s2 }
   0x5   :  { %p95_p2 = pnand %p93_p1, %p90_p0 }
   0x7   :  { %98 = shalt.err (!%p95_p2)
}
   0x8   :  { %s99_s21 = scalar_lea.vmem %s22_s13, 1024  ;;  %p104_p4 = scmp.lt.s32.totalorder %s22_s13, %s22_s13 }
   0x9   :  { %p100_p3 = scmp.ne.s32.totalorder %s22_s13, %s99_s21  ;;  %p105_p5 = scmp.lt.s32.totalorder %s99_s21, %s99_s21 }
   0xb   :  { %p106_p6 = por %p105_p5, %p104_p4 }
   0xd   :  { %p107_p7 = pnand %p106_p6, %p100_p3 }
   0xf   :  { %110 = shalt.err (!%p107_p7)
}
  0x10   :  { %s138_s22 = smov 512   ;;  %s139_s23 = smov 32  }
  0x11   :  { %27 = dma.hbm_to_vmem [thread:$0]  %s199_s2, 1024, %s22_s13, [#allocation5], %s138_s22, %s138_s22, %s139_s23  }
  0x12   :  { %133 = dma.done.wait [#allocation5], 1024  }
  0x13   :  { %134 = vsyncadd [#allocation5], 4294966272  ;;  %s32_s28 = sadd.f32 1.0, %s197_s0  ;;  %v33_v1 = vld [vmem:[#allocation4] sm:$0xff]  ;;  %v51_v2 = vstv %s198_s1  ;;  %v34_v3 = vld [vmem:[#allocation4 + $0x8] sm:$0xff]  ;;  %s140_s0 = smov [#allocation7]  }
  0x14   :  { %v35_v4 = vld [vmem:[#allocation4 + $0x10] sm:$0xff]  ;;  %v36_v8 = vld [vmem:[#allocation4 + $0x18] sm:$0xff]  ;;  %v37_v9 = vld [vmem:[#allocation4 + $0x20] sm:$0xff]  ;;  %s73_s2 = sshll.u32 %s140_s0, 4  ;;  %s74_s2 = int_to_ptr.vmem [resolvable:$true] %s73_s2 }
  0x15   :  { %v41_v0 = vstv %s32_s28  ;;  %v38_v10 = vld [vmem:[#allocation4 + $0x28] sm:$0xff]  ;;  %v39_v14 = vld [vmem:[#allocation4 + $0x30] sm:$0xff]  ;;  %v40_v15 = vld [vmem:[#allocation4 + $0x38] sm:$0xff]  ;;  %s111_s1 = scalar_lea.vmem %s74_s2, 1024  ;;  %p116_p9 = scmp.lt.s32.totalorder %s74_s2, %s74_s2 }
  0x16   :  { %v42_v5 = vmul.f32 %v41_v0, %v33_v1  ;;  %v43_v6 = vmul.f32 %v41_v0, %v34_v3  ;;  %v44_v7 = vmul.f32 %v41_v0, %v35_v4  ;;  %v45_v11 = vmul.f32 %v41_v0, %v36_v8  ;;  %p112_p8 = scmp.ne.s32.totalorder %s74_s2, %s111_s1  ;;  %p117_p10 = scmp.lt.s32.totalorder %s111_s1, %s111_s1 }
  0x17   :  { %v46_v12 = vmul.f32 %v41_v0, %v37_v9  ;;  %v47_v13 = vmul.f32 %v41_v0, %v38_v10  ;;  %v48_v19 = vmul.f32 %v41_v0, %v39_v14  ;;  %v49_v23 = vmul.f32 %v41_v0, %v40_v15 }
  0x18   :  { %v52_v16 = vadd.f32 %v51_v2, %v42_v5  ;;  %v53_v17 = vadd.f32 %v51_v2, %v43_v6  ;;  %v54_v18 = vadd.f32 %v51_v2, %v44_v7  ;;  %v55_v20 = vadd.f32 %v51_v2, %v45_v11  ;;  %p118_p11 = por %p117_p10, %p116_p9 }
  0x19   :  { %v56_v21 = vadd.f32 %v51_v2, %v46_v12  ;;  %v57_v22 = vadd.f32 %v51_v2, %v47_v13  ;;  %v58_v24 = vadd.f32 %v51_v2, %v48_v19  ;;  %v59_v25 = vadd.f32 %v51_v2, %v49_v23 }
  0x1a   :  { %60 = vst [vmem:[#allocation7] sm:$0xff] %v52_v16  ;;  %61 = vst [vmem:[#allocation7 + $0x8] sm:$0xff] %v53_v17  ;;  %p119_p12 = pnand %p118_p11, %p112_p8 }
  0x1b   :  { %62 = vst [vmem:[#allocation7 + $0x10] sm:$0xff] %v54_v18  ;;  %63 = vst [vmem:[#allocation7 + $0x18] sm:$0xff] %v55_v20 }
  0x1c   :  { %64 = vst [vmem:[#allocation7 + $0x20] sm:$0xff] %v56_v21  ;;  %65 = vst [vmem:[#allocation7 + $0x28] sm:$0xff] %v57_v22 }
  0x1d   :  { %66 = vst [vmem:[#allocation7 + $0x30] sm:$0xff] %v58_v24  ;;  %67 = vst [vmem:[#allocation7 + $0x38] sm:$0xff] %v59_v25 }
  0x1e   :  { %122 = shalt.err (!%p119_p12)
}
  0x1f   :  { %s123_s6 = scalar_lea.hbm %s200_s3, 1024 }
  0x20   :  { %p124_p13 = scmp.ne.s32.totalorder %s200_s3, %s123_s6  ;;  %p127_p0 = scmp.lt.u32.totalorder %s123_s6, %s200_s3 }
  0x22   :  { %p129_p1 = pnand %p127_p0, %p124_p13 }
  0x24   :  { %132 = shalt.err (!%p129_p1)
}
  0x25   :  { %79 = dma.vmem_to_hbm [thread:$0]  %s74_s2, 1024, %s200_s3, [#allocation6], %s138_s22, %s138_s22, %s139_s23  }
  0x26   :  { %135 = dma.done.wait [#allocation6], 1024  }
  0x27   :  { %136 = vsyncadd [#allocation6], 4294966272 }
  0x28   :  { %83 = vsyncpa [#allocation5], 1 }
  0x29   :  { %84 = vsyncpa [#allocation6], 1 }

</bundles_post_ra>
